<compile_context>
chip_gen: v7x
topology: tpu7x:2x2x1
jax: 0.10.0
libtpu: 0.0.40
codegen_flags: <defaults>
</compile_context>

<pallas_src>
import jax
import jax.numpy as jnp
from jax import lax
from jax.experimental import pallas as pl
from jax.experimental.pallas import tpu as pltpu

# Transposed-conv phase decomposition (stride=2, kernel=4, padding=1).
# Output row oy = 2*m + py reads zero-padded input rows m + oy_off with kernel
# row ky;  same structure along x (px / ox_off / kx).
_ROW_TAPS = (((0, 3), (1, 1)),      # py=0: (oy_off, ky)
             ((1, 2), (2, 0)))      # py=1
_COL_TAPS = ({0: 3, 1: 1},          # px=0: {ox_off: kx}
             {1: 2, 2: 0})          # px=1


def _fuse_weights(w, Ci, Co, dtype):
    """Build per-py fused weights (2, 6*Ci, 2*Co) for the K/N-fused matmul.

    K layout: for row tap t (2, ascending oy_off) x col shift o (3): block
    rows [(3*t+o)*Ci, (3*t+o+1)*Ci).  N layout: [px=0 Co cols | px=1 Co cols],
    matching the (N, H, 2, W, 2*Co) phase-interleaved conv output layout.
    """
    zeros = jnp.zeros((Ci, Co), dtype)
    per_py = []
    for py in range(2):
        blocks = []
        for (_, ky) in _ROW_TAPS[py]:
            for o in range(3):
                halves = [w[ky, _COL_TAPS[px][o]] if o in _COL_TAPS[px] else zeros
                          for px in range(2)]
                blocks.append(jnp.concatenate(halves, axis=1))   # (Ci, 2*Co)
        per_py.append(jnp.concatenate(blocks, axis=0))           # (6*Ci, 2*Co)
    return jnp.stack(per_py, axis=0)                             # (2, 6*Ci, 2*Co)


def _reverse_attn_kernel(x_ref, wf_ref, skip_ref, ms_ref, mc_ref, os_ref, oc_ref):
    # x_ref    : (1, H+2, W+2, Ci)    zero-padded decoder feats (compute dtype)
    # wf_ref   : (2, 6*Ci, 2*Co)      fused transp-conv weights (per py)
    # skip_ref : (1, 2*TH, 2*W*Cs)    encoder skip strip, channels folded into lanes
    # ms_ref   : (1, 2*TH, 2*W*Cs)    mask for the skip channels
    # mc_ref   : (1, TH, 2, W, 2*Co)  mask for the conv channels (phase layout)
    # os_ref   : (1, 2*TH, 2*W*Cs)    out: leaky(skip * mask_s)
    # oc_ref   : (1, TH, 2, W, 2*Co)  out: leaky(conv * mask_c), phase layout
    TH = mc_ref.shape[1]
    W = mc_ref.shape[3]
    Ci = x_ref.shape[3]
    Co2 = wf_ref.shape[2]

    # ---- skip branch: lane-dense element-wise at full resolution ----
    sp = skip_ref[0] * ms_ref[0]
    os_ref[0] = jnp.where(sp >= 0, sp, 0.2 * sp).astype(os_ref.dtype)

    # ---- conv branch ----
    s = pl.program_id(1)
    row0 = s * TH
    if TH % 8 == 0:
        row0 = pl.multiple_of(row0, 8)
    xs = x_ref[0, pl.ds(row0, TH + 2)]              # (TH+2, W+2, Ci)

    for py in range(2):
        # One K-fused patch per output-row phase: 2 row taps x 3 col shifts,
        # built in a single materialization (no 3 lane-sparse strip copies).
        pieces = [xs[oy:oy + TH, ox:ox + W, :]
                  for oy in (py, py + 1) for ox in range(3)]
        patch = jnp.concatenate(pieces, axis=-1).reshape(TH * W, 6 * Ci)
        conv = jnp.dot(patch, wf_ref[py],
                       preferred_element_type=jnp.float32).reshape(TH, W, Co2)
        prod = conv * mc_ref[0, :, py, :, :]        # full 2*Co lane-dense slab
        oc_ref[0, :, py, :, :] = jnp.where(prod >= 0, prod,
                                           0.2 * prod).astype(oc_ref.dtype)


def _vmem_budget(budget_bytes, limit_bytes):
    """Generation-aware, mutually consistent picker budget / Mosaic VMEM limit."""
    try:
        cap = pltpu.get_tpu_info().vmem_capacity_bytes
    except Exception:
        cap = 64 * 1024 * 1024          # conservative: v7x per-TC capacity
    if limit_bytes is None:
        limit_bytes = min(int(cap * 3 // 4), 100 * 1024 * 1024)
    if budget_bytes is None:
        budget_bytes = max(limit_bytes - 8 * 1024 * 1024, limit_bytes // 2)
    budget_bytes = min(budget_bytes, limit_bytes)
    return budget_bytes, limit_bytes


def _pick_strip_rows(H, W, Ci, Cs, Co, io_bytes, cd_bytes, budget_bytes):
    """Largest valid divisor of H whose double-buffered blocks fit the budget.

    Valid strips keep the skip blocks (8,128)-legal: TH % 4 == 0 or TH == H.
    """
    candidates = [th for th in range(1, H + 1)
                  if H % th == 0 and (th % 4 == 0 or th == H)]
    best = None
    for th in candidates:
        # Double-buffered pipelined blocks.
        x_res = 2 * (H + 2) * (W + 2) * Ci * cd_bytes
        wf_res = 2 * 2 * 6 * Ci * 2 * Co * cd_bytes
        skip_io = 2 * 3 * (2 * th) * (2 * W * Cs) * io_bytes
        conv_io = 2 * 2 * th * 2 * W * 2 * Co * io_bytes
        # In-kernel temporaries (conservative: both py iterations live).
        xs_tmp = (th + 2) * (W + 2) * Ci * cd_bytes
        patch = 2 * th * W * 6 * Ci * cd_bytes
        conv_tmp = 2 * 2 * th * W * 2 * Co * 4
        sp_tmp = (2 * th) * (2 * W * Cs) * io_bytes
        total = x_res + wf_res + skip_io + conv_io + xs_tmp + patch + conv_tmp + sp_tmp
        if total <= budget_bytes and (best is None or th > best):
            best = th
    if best is None:
        best = min(candidates)          # smallest legal strip; rely on limit headroom
    return best


def reverse_attention(ec_features_skip, dc_features, mask_features, weight,
                      output_channels, *, compute_dtype=jnp.bfloat16,
                      strip_rows=None, vmem_budget_bytes=None,
                      vmem_limit_bytes=None):
    """Matches ReverseAttention.forward (bn=False, activ='leaky', convBias=False).

    Args (NCHW, like PyTorch):
      ec_features_skip : (N, Cs, 2H, 2W)
      dc_features      : (N, Ci, H, W)
      mask_features    : (N, Cs+Co, 2H, 2W)
      weight           : (Ci, Co, 4, 4)   ConvTranspose2d weight
    Returns:
      (out[:, output_channels:], out[:, :output_channels])  in NCHW
    """
    N, Ci, H, W = dc_features.shape
    Co = weight.shape[1]
    Cs = ec_features_skip.shape[1]
    Ct = Cs + Co
    assert ec_features_skip.shape == (N, Cs, 2 * H, 2 * W)
    assert mask_features.shape == (N, Ct, 2 * H, 2 * W)
    out_dtype = ec_features_skip.dtype

    budget, limit = _vmem_budget(vmem_budget_bytes, vmem_limit_bytes)

    # ---- glue: layout prep (plain JAX; phase interleave stays a free reshape) ----
    x = jnp.transpose(dc_features, (0, 2, 3, 1)).astype(compute_dtype)
    x_pad = jnp.pad(x, ((0, 0), (1, 1), (1, 1), (0, 0)))            # (N,H+2,W+2,Ci)
    w = jnp.transpose(weight, (2, 3, 0, 1)).astype(compute_dtype)   # (4,4,Ci,Co)
    wf = _fuse_weights(w, Ci, Co, compute_dtype)                    # (2,6Ci,2Co)

    # Skip branch: fold channels into the lane axis (free row-major reshape).
    skip = jnp.transpose(ec_features_skip, (0, 2, 3, 1)).reshape(N, 2 * H, 2 * W * Cs)
    mask_s = jnp.transpose(mask_features[:, :Cs], (0, 2, 3, 1)).reshape(N, 2 * H, 2 * W * Cs)
    # Conv branch mask: (N,2H,2W,Co) -> (N,H,2,W,2*Co) is a free reshape.
    mask_c = jnp.transpose(mask_features[:, Cs:], (0, 2, 3, 1)).reshape(N, H, 2, W, 2 * Co)

    io_bytes = jnp.dtype(out_dtype).itemsize
    cd_bytes = jnp.dtype(compute_dtype).itemsize
    if strip_rows is None:
        strip_rows = _pick_strip_rows(H, W, Ci, Cs, Co, io_bytes, cd_bytes, budget)
    TH = strip_rows
    assert H % TH == 0 and (TH % 4 == 0 or TH == H), (
        "strip_rows must divide H and be a multiple of 4 (or equal H)")
    NS = H // TH

    # Bias the 2-TC split (v7x) onto the batch axis when possible so both cores
    # don't DMA the full padded x of the same image.
    if N >= 2:
        dims = ("parallel", "arbitrary")
    else:
        dims = ("arbitrary", "parallel")

    # ---- Pallas hot path ----
    out_skip, out_conv = pl.pallas_call(
        _reverse_attn_kernel,
        out_shape=(
            jax.ShapeDtypeStruct((N, 2 * H, 2 * W * Cs), out_dtype),
            jax.ShapeDtypeStruct((N, H, 2, W, 2 * Co), out_dtype),
        ),
        grid_spec=pltpu.PrefetchScalarGridSpec(
            num_scalar_prefetch=0,
            grid=(N, NS),
            in_specs=[
                # Full padded x per batch element (block constant along s so it
                # is only re-DMA'd when n changes); strips sliced with pl.ds.
                pl.BlockSpec((1, H + 2, W + 2, Ci), lambda n, s: (n, 0, 0, 0)),
                pl.BlockSpec((2, 6 * Ci, 2 * Co), lambda n, s: (0, 0, 0)),
                pl.BlockSpec((1, 2 * TH, 2 * W * Cs), lambda n, s: (n, s, 0)),
                pl.BlockSpec((1, 2 * TH, 2 * W * Cs), lambda n, s: (n, s, 0)),
                pl.BlockSpec((1, TH, 2, W, 2 * Co), lambda n, s: (n, s, 0, 0, 0)),
            ],
            out_specs=[
                pl.BlockSpec((1, 2 * TH, 2 * W * Cs), lambda n, s: (n, s, 0)),
                pl.BlockSpec((1, TH, 2, W, 2 * Co), lambda n, s: (n, s, 0, 0, 0)),
            ],
        ),
        compiler_params=pltpu.CompilerParams(
            dimension_semantics=dims,
            vmem_limit_bytes=limit),
    )(x_pad, wf, skip, mask_s, mask_c)

    # ---- glue: back to NCHW (phase de-interleave is a free reshape) ----
    skip_nchw = jnp.transpose(out_skip.reshape(N, 2 * H, 2 * W, Cs), (0, 3, 1, 2))
    conv_nchw = jnp.transpose(out_conv.reshape(N, 2 * H, 2 * W, Co), (0, 3, 1, 2))

    if output_channels == Cs:
        # Split boundary coincides with the skip/conv boundary (standard LBAM).
        return conv_nchw, skip_nchw
    full = jnp.concatenate([skip_nchw, conv_nchw], axis=1)
    return full[:, output_channels:], full[:, :output_channels]


if __name__ == "__main__":
    key = jax.random.PRNGKey(0)
    k1, k2, k3, k4 = jax.random.split(key, 4)

    # Small shapes consistent with the module: ConvTranspose2d doubles spatial dims.
    N, Ci, Co, H, W = 2, 8, 4, 8, 8
    Cs = Co  # LBAM skip connections carry outputChannels channels

    dc = jax.random.normal(k1, (N, Ci, H, W), jnp.float32)
    skip = jax.random.normal(k2, (N, Cs, 2 * H, 2 * W), jnp.float32)
    mask = jax.random.uniform(k3, (N, Cs + Co, 2 * H, 2 * W), jnp.float32)
    # deterministic "gaussian(0, 0.02)" init of ConvTranspose2d weight (Ci, Co, 4, 4)
    weight = 0.02 * jax.random.normal(k4, (Ci, Co, 4, 4), jnp.float32)

    # pure-JAX reference (transposed conv via lhs dilation)
    y_ref = lax.conv_general_dilated(
        dc,
        jnp.flip(jnp.transpose(weight, (1, 0, 2, 3)), (2, 3)),
        window_strides=(1, 1),
        padding=((2, 2), (2, 2)),
        lhs_dilation=(2, 2),
        dimension_numbers=("NCHW", "OIHW", "NCHW"),
    )
    cat = jnp.concatenate([skip, y_ref], axis=1) * mask
    ref = jnp.where(cat >= 0, cat, 0.2 * cat)
    ref_a, ref_b = ref[:, Co:], ref[:, :Co]

    # 1) f32 compute path, forced multi-strip grid (exercises H-strip tiling)
    out_a, out_b = reverse_attention(skip, dc, mask, weight, Co,
                                     compute_dtype=jnp.float32, strip_rows=4)
    jax.block_until_ready((out_a, out_b))
    assert out_a.shape == ref_a.shape and out_b.shape == ref_b.shape
    assert jnp.allclose(out_a, ref_a, atol=1e-5, rtol=1e-5)
    assert jnp.allclose(out_b, ref_b, atol=1e-5, rtol=1e-5)

    # 2) default bf16 MXU-operand path (v6e/v7x fast path), auto strip selection
    bf_a, bf_b = reverse_attention(skip, dc, mask, weight, Co)
    jax.block_until_ready((bf_a, bf_b))
    assert jnp.allclose(bf_a, ref_a, atol=1e-2, rtol=1e-2)
    assert jnp.allclose(bf_b, ref_b, atol=1e-2, rtol=1e-2)

    print("KERNEL_OK")
</pallas_src>

<mosaic_0001>
module attributes {stable_mosaic.version = 11 : i64} {
  func.func @_reverse_attn_kernel(%arg0: i32, %arg1: i32, %arg2: memref<1x10x10x8xf32, #tpu.memory_space<vmem>>, %arg3: memref<2x48x8xf32, #tpu.memory_space<vmem>>, %arg4: memref<1x8x64xf32, #tpu.memory_space<vmem>>, %arg5: memref<1x8x64xf32, #tpu.memory_space<vmem>>, %arg6: memref<1x4x2x8x8xf32, #tpu.memory_space<vmem>>, %arg7: memref<1x8x64xf32, #tpu.memory_space<vmem>>, %arg8: memref<1x4x2x8x8xf32, #tpu.memory_space<vmem>>) attributes {dimension_semantics = [#tpu.dimension_semantics<parallel>, #tpu.dimension_semantics<arbitrary>], iteration_bounds = array<i64: 2, 2>, scalar_prefetch = 0 : i64, scratch_operands = 0 : i64, tpu.core_type = #tpu.core_type<tc>, window_params = [{transform_indices = @transform_0, window_bounds = array<i64: 1, 10, 10, 8>}, {pipeline_mode = #tpu.pipeline_mode<synchronous>, transform_indices = @transform_1, window_bounds = array<i64: 2, 48, 8>}, {transform_indices = @transform_2, window_bounds = array<i64: 1, 8, 64>}, {transform_indices = @transform_3, window_bounds = array<i64: 1, 8, 64>}, {transform_indices = @transform_4, window_bounds = array<i64: 1, 4, 2, 8, 8>}, {transform_indices = @transform_5, window_bounds = array<i64: 1, 8, 64>}, {transform_indices = @transform_6, window_bounds = array<i64: 1, 4, 2, 8, 8>}]} {
    %c0 = arith.constant 0 : index
    %c0_0 = arith.constant 0 : index
    %c0_1 = arith.constant 0 : index
    %0 = vector.load %arg4[%c0, %c0_0, %c0_1] : memref<1x8x64xf32, #tpu.memory_space<vmem>>, vector<1x8x64xf32>
    %1 = vector.shape_cast %0 : vector<1x8x64xf32> to vector<8x64xf32>
    %c0_2 = arith.constant 0 : index
    %c0_3 = arith.constant 0 : index
    %c0_4 = arith.constant 0 : index
    %2 = vector.load %arg5[%c0_2, %c0_3, %c0_4] : memref<1x8x64xf32, #tpu.memory_space<vmem>>, vector<1x8x64xf32>
    %3 = vector.shape_cast %2 : vector<1x8x64xf32> to vector<8x64xf32>
    %4 = arith.mulf %1, %3 : vector<8x64xf32>
    %cst = arith.constant 0.000000e+00 : f32
    %5 = vector.broadcast %cst : f32 to vector<8x64xf32>
    %6 = arith.cmpf oge, %4, %5 : vector<8x64xf32>
    %cst_5 = arith.constant 2.000000e-01 : f32
    %7 = vector.broadcast %cst_5 : f32 to vector<8x64xf32>
    %8 = arith.mulf %7, %4 : vector<8x64xf32>
    %9 = arith.select %6, %4, %8 : vector<8x64xi1>, vector<8x64xf32>
    %c0_6 = arith.constant 0 : index
    %c0_7 = arith.constant 0 : index
    %c0_8 = arith.constant 0 : index
    %10 = vector.load %arg7[%c0_6, %c0_7, %c0_8] : memref<1x8x64xf32, #tpu.memory_space<vmem>>, vector<1x8x64xf32>
    %11 = vector.shape_cast %10 : vector<1x8x64xf32> to vector<8x64xf32>
    %12 = vector.shape_cast %9 : vector<8x64xf32> to vector<1x8x64xf32>
    tpu.vector_store %arg7[%c0_6, %c0_7, %c0_8], %12 {strides = array<i32>} : memref<1x8x64xf32, #tpu.memory_space<vmem>>, vector<1x8x64xf32>,
    %c4_i32 = arith.constant 4 : i32
    %13 = arith.muli %arg1, %c4_i32 : i32
    %c0_9 = arith.constant 0 : index
    %14 = arith.index_cast %13 : i32 to index
    %c0_10 = arith.constant 0 : index
    %c0_11 = arith.constant 0 : index
    %15 = vector.load %arg2[%c0_9, %14, %c0_10, %c0_11] : memref<1x10x10x8xf32, #tpu.memory_space<vmem>>, vector<1x6x10x8xf32>
    %16 = vector.shape_cast %15 : vector<1x6x10x8xf32> to vector<6x10x8xf32>
    %17 = vector.extract_strided_slice %16 {offsets = [0, 0, 0], sizes = [4, 8, 8], strides = [1, 1, 1]} : vector<6x10x8xf32> to vector<4x8x8xf32>
    %18 = vector.extract_strided_slice %16 {offsets = [0, 1, 0], sizes = [4, 8, 8], strides = [1, 1, 1]} : vector<6x10x8xf32> to vector<4x8x8xf32>
    %19 = vector.extract_strided_slice %16 {offsets = [0, 2, 0], sizes = [4, 8, 8], strides = [1, 1, 1]} : vector<6x10x8xf32> to vector<4x8x8xf32>
    %20 = vector.extract_strided_slice %16 {offsets = [1, 0, 0], sizes = [4, 8, 8], strides = [1, 1, 1]} : vector<6x10x8xf32> to vector<4x8x8xf32>
    %21 = vector.extract_strided_slice %16 {offsets = [1, 1, 0], sizes = [4, 8, 8], strides = [1, 1, 1]} : vector<6x10x8xf32> to vector<4x8x8xf32>
    %22 = vector.extract_strided_slice %16 {offsets = [1, 2, 0], sizes = [4, 8, 8], strides = [1, 1, 1]} : vector<6x10x8xf32> to vector<4x8x8xf32>
    %23 = tpu.concatenate %17, %18, %19, %20, %21, %22 in 2 : vector<4x8x8xf32>, vector<4x8x8xf32>, vector<4x8x8xf32>, vector<4x8x8xf32>, vector<4x8x8xf32>, vector<4x8x8xf32> -> vector<4x8x48xf32>
    %24 = vector.shape_cast %23 : vector<4x8x48xf32> to vector<32x48xf32>
    %c0_12 = arith.constant 0 : index
    %c0_13 = arith.constant 0 : index
    %c0_14 = arith.constant 0 : index
    %25 = vector.load %arg3[%c0_12, %c0_13, %c0_14] : memref<2x48x8xf32, #tpu.memory_space<vmem>>, vector<1x48x8xf32>
    %26 = vector.shape_cast %25 : vector<1x48x8xf32> to vector<48x8xf32>
    %cst_15 = arith.constant dense<0.000000e+00> : vector<32x8xf32>
    %27 = tpu.matmul %24, %26, %cst_15 {dimension_numbers = #tpu.dot_dimension_numbers<[1], [0], [0], [1], [0, 0, 1, 1], [], []>} : vector<32x48xf32>, vector<48x8xf32>, vector<32x8xf32> -> vector<32x8xf32>
    %28 = vector.shape_cast %27 : vector<32x8xf32> to vector<4x8x8xf32>
    %c0_16 = arith.constant 0 : index
    %c0_17 = arith.constant 0 : index
    %c0_18 = arith.constant 0 : index
    %c0_19 = arith.constant 0 : index
    %c0_20 = arith.constant 0 : index
    %29 = vector.load %arg6[%c0_16, %c0_17, %c0_18, %c0_19, %c0_20] : memref<1x4x2x8x8xf32, #tpu.memory_space<vmem>>, vector<1x4x1x8x8xf32>
    %30 = vector.shape_cast %29 : vector<1x4x1x8x8xf32> to vector<4x8x8xf32>
    %31 = arith.mulf %28, %30 : vector<4x8x8xf32>
    %cst_21 = arith.constant 0.000000e+00 : f32
    %32 = vector.broadcast %cst_21 : f32 to vector<4x8x8xf32>
    %33 = arith.cmpf oge, %31, %32 : vector<4x8x8xf32>
    %cst_22 = arith.constant 2.000000e-01 : f32
    %34 = vector.broadcast %cst_22 : f32 to vector<4x8x8xf32>
    %35 = arith.mulf %34, %31 : vector<4x8x8xf32>
    %36 = arith.select %33, %31, %35 : vector<4x8x8xi1>, vector<4x8x8xf32>
    %c0_23 = arith.constant 0 : index
    %c0_24 = arith.constant 0 : index
    %c0_25 = arith.constant 0 : index
    %c0_26 = arith.constant 0 : index
    %c0_27 = arith.constant 0 : index
    %37 = vector.load %arg8[%c0_23, %c0_24, %c0_25, %c0_26, %c0_27] : memref<1x4x2x8x8xf32, #tpu.memory_space<vmem>>, vector<1x4x1x8x8xf32>
    %38 = vector.shape_cast %37 : vector<1x4x1x8x8xf32> to vector<4x8x8xf32>
    %39 = vector.shape_cast %36 : vector<4x8x8xf32> to vector<1x4x1x8x8xf32>
    tpu.vector_store %arg8[%c0_23, %c0_24, %c0_25, %c0_26, %c0_27], %39 {strides = array<i32>} : memref<1x4x2x8x8xf32, #tpu.memory_space<vmem>>, vector<1x4x1x8x8xf32>,
    %40 = vector.extract_strided_slice %16 {offsets = [1, 0, 0], sizes = [4, 8, 8], strides = [1, 1, 1]} : vector<6x10x8xf32> to vector<4x8x8xf32>
    %41 = vector.extract_strided_slice %16 {offsets = [1, 1, 0], sizes = [4, 8, 8], strides = [1, 1, 1]} : vector<6x10x8xf32> to vector<4x8x8xf32>
    %42 = vector.extract_strided_slice %16 {offsets = [1, 2, 0], sizes = [4, 8, 8], strides = [1, 1, 1]} : vector<6x10x8xf32> to vector<4x8x8xf32>
    %43 = vector.extract_strided_slice %16 {offsets = [2, 0, 0], sizes = [4, 8, 8], strides = [1, 1, 1]} : vector<6x10x8xf32> to vector<4x8x8xf32>
    %44 = vector.extract_strided_slice %16 {offsets = [2, 1, 0], sizes = [4, 8, 8], strides = [1, 1, 1]} : vector<6x10x8xf32> to vector<4x8x8xf32>
    %45 = vector.extract_strided_slice %16 {offsets = [2, 2, 0], sizes = [4, 8, 8], strides = [1, 1, 1]} : vector<6x10x8xf32> to vector<4x8x8xf32>
    %46 = tpu.concatenate %40, %41, %42, %43, %44, %45 in 2 : vector<4x8x8xf32>, vector<4x8x8xf32>, vector<4x8x8xf32>, vector<4x8x8xf32>, vector<4x8x8xf32>, vector<4x8x8xf32> -> vector<4x8x48xf32>
    %47 = vector.shape_cast %46 : vector<4x8x48xf32> to vector<32x48xf32>
    %c1 = arith.constant 1 : index
    %c0_28 = arith.constant 0 : index
    %c0_29 = arith.constant 0 : index
    %48 = vector.load %arg3[%c1, %c0_28, %c0_29] : memref<2x48x8xf32, #tpu.memory_space<vmem>>, vector<1x48x8xf32>
    %49 = vector.shape_cast %48 : vector<1x48x8xf32> to vector<48x8xf32>
    %cst_30 = arith.constant dense<0.000000e+00> : vector<32x8xf32>
    %50 = tpu.matmul %47, %49, %cst_30 {dimension_numbers = #tpu.dot_dimension_numbers<[1], [0], [0], [1], [0, 0, 1, 1], [], []>} : vector<32x48xf32>, vector<48x8xf32>, vector<32x8xf32> -> vector<32x8xf32>
    %51 = vector.shape_cast %50 : vector<32x8xf32> to vector<4x8x8xf32>
    %c0_31 = arith.constant 0 : index
    %c0_32 = arith.constant 0 : index
    %c1_33 = arith.constant 1 : index
    %c0_34 = arith.constant 0 : index
    %c0_35 = arith.constant 0 : index
    %52 = vector.load %arg6[%c0_31, %c0_32, %c1_33, %c0_34, %c0_35] : memref<1x4x2x8x8xf32, #tpu.memory_space<vmem>>, vector<1x4x1x8x8xf32>
    %53 = vector.shape_cast %52 : vector<1x4x1x8x8xf32> to vector<4x8x8xf32>
    %54 = arith.mulf %51, %53 : vector<4x8x8xf32>
    %cst_36 = arith.constant 0.000000e+00 : f32
    %55 = vector.broadcast %cst_36 : f32 to vector<4x8x8xf32>
    %56 = arith.cmpf oge, %54, %55 : vector<4x8x8xf32>
    %cst_37 = arith.constant 2.000000e-01 : f32
    %57 = vector.broadcast %cst_37 : f32 to vector<4x8x8xf32>
    %58 = arith.mulf %57, %54 : vector<4x8x8xf32>
    %59 = arith.select %56, %54, %58 : vector<4x8x8xi1>, vector<4x8x8xf32>
    %c0_38 = arith.constant 0 : index
    %c0_39 = arith.constant 0 : index
    %c1_40 = arith.constant 1 : index
    %c0_41 = arith.constant 0 : index
    %c0_42 = arith.constant 0 : index
    %60 = vector.load %arg8[%c0_38, %c0_39, %c1_40, %c0_41, %c0_42] : memref<1x4x2x8x8xf32, #tpu.memory_space<vmem>>, vector<1x4x1x8x8xf32>
    %61 = vector.shape_cast %60 : vector<1x4x1x8x8xf32> to vector<4x8x8xf32>
    %62 = vector.shape_cast %59 : vector<4x8x8xf32> to vector<1x4x1x8x8xf32>
    tpu.vector_store %arg8[%c0_38, %c0_39, %c1_40, %c0_41, %c0_42], %62 {strides = array<i32>} : memref<1x4x2x8x8xf32, #tpu.memory_space<vmem>>, vector<1x4x1x8x8xf32>,
    return
  }
  func.func @transform_0(%arg0: i32, %arg1: i32) -> (i32, i32, i32, i32) {
    %c0_i32 = arith.constant 0 : i32
    %c0_i32_0 = arith.constant 0 : i32
    %c0_i32_1 = arith.constant 0 : i32
    %c0_i32_2 = arith.constant 0 : i32
    return %arg0, %c0_i32, %c0_i32_0, %c0_i32_1 : i32, i32, i32, i32
  }
  func.func @transform_1(%arg0: i32, %arg1: i32) -> (i32, i32, i32) {
    %c0_i32 = arith.constant 0 : i32
    %c0_i32_0 = arith.constant 0 : i32
    %c0_i32_1 = arith.constant 0 : i32
    %c0_i32_2 = arith.constant 0 : i32
    return %c0_i32, %c0_i32_0, %c0_i32_1 : i32, i32, i32
  }
  func.func @transform_2(%arg0: i32, %arg1: i32) -> (i32, i32, i32) {
    %c0_i32 = arith.constant 0 : i32
    %c0_i32_0 = arith.constant 0 : i32
    return %arg0, %arg1, %c0_i32 : i32, i32, i32
  }
  func.func @transform_3(%arg0: i32, %arg1: i32) -> (i32, i32, i32) {
    %c0_i32 = arith.constant 0 : i32
    %c0_i32_0 = arith.constant 0 : i32
    return %arg0, %arg1, %c0_i32 : i32, i32, i32
  }
  func.func @transform_4(%arg0: i32, %arg1: i32) -> (i32, i32, i32, i32, i32) {
    %c0_i32 = arith.constant 0 : i32
    %c0_i32_0 = arith.constant 0 : i32
    %c0_i32_1 = arith.constant 0 : i32
    %c0_i32_2 = arith.constant 0 : i32
    return %arg0, %arg1, %c0_i32, %c0_i32_0, %c0_i32_1 : i32, i32, i32, i32, i32
  }
  func.func @transform_5(%arg0: i32, %arg1: i32) -> (i32, i32, i32) {
    %c0_i32 = arith.constant 0 : i32
    %c0_i32_0 = arith.constant 0 : i32
    return %arg0, %arg1, %c0_i32 : i32, i32, i32
  }
  func.func @transform_6(%arg0: i32, %arg1: i32) -> (i32, i32, i32, i32, i32) {
    %c0_i32 = arith.constant 0 : i32
    %c0_i32_0 = arith.constant 0 : i32
    %c0_i32_1 = arith.constant 0 : i32
    %c0_i32_2 = arith.constant 0 : i32
    return %arg0, %arg1, %c0_i32, %c0_i32_0, %c0_i32_1 : i32, i32, i32, i32, i32
  }
}

</mosaic_0001>

<bundles_post_ra>
// kernel: tpu_custom_call.1
= control target key start
LH: loop header
LB: loop body
LE: loop exit
PB: predicated region body
PF: predicated region fallthrough
CT: control target
= control target key end

     0   :  { %s1757_s0 = inlined_call_operand.vmem [shape: f32[2,10,10,8], index: 0, kind: input, shape index: {}]   ;;  %s1758_s1 = inlined_call_operand.vmem [shape: f32[2,48,8], index: 1, kind: input, shape index: {}]   ;;  %s1759_s2 = inlined_call_operand.vmem [shape: f32[2,16,64], index: 2, kind: input, shape index: {}]   ;;  %s1760_s3 = inlined_call_operand.vmem [shape: f32[2,16,64], index: 3, kind: input, shape index: {}]   ;;  %s1761_s4 = inlined_call_operand.vmem [shape: f32[2,8,2,8,8], index: 4, kind: input, shape index: {}]   ;;  %s1762_s5 = inlined_call_operand.hbm [shape: f32[2,16,64], index: 5, kind: output, shape index: {0}]   ;;  %s1763_s6 = inlined_call_operand.hbm [shape: f32[2,8,2,8,8], index: 6, kind: output, shape index: {1}]  }
   0x1   :  { %1770 = sst [smem:[#allocation10_spill]] %s1757_s0 }
   0x2   :  { %1771 = sst [smem:[#allocation11_spill]] %s1758_s1 }
   0x3   :  { %1772 = sst [smem:[#allocation12_spill]] %s1759_s2 }
   0x4   :  { %12 = vsyncpa [#allocation3], 0 }
   0x5   :  { %14 = vsyncpa [#allocation3 + $0x1], 0 }
   0x6   :  { %15 = vsyncpa [#allocation5], 0 }
   0x7   :  { %17 = vsyncpa [#allocation5 + $0x1], 0  ;;  %s1398_s21 = smov 0   ;;  %s1400_s22 = smov 0  }
   0x8   :  { %s1402_s23 = smov 0   ;;  %s1404_s24 = smov 0  }
   0x9   :  { %s1406_s25 = smov 0   ;;  %s1408_s26 = smov 0  }
   0xa   :  { %s1410_s27 = smov 0   ;;  %s1412_s28 = smov 0  }
   0xb LB: > { %s1012_s29 = sadd.s32 4294967295, %s1353_s28   ;;  %s1013_s30 = sadd.s32 4294967294, %s1353_s28   ;;  %s1353_s28 = sphi %s1412_s28, %s23_s28   ;;  %s1349_s27 = sphi %s1410_s27, %s1790_s27   ;;  %s1345_s26 = sphi %s1408_s26, %s1789_s26   ;;  %s1341_s25 = sphi %s1406_s25, %s1788_s25   ;;  %s1337_s24 = sphi %s1404_s24, %s1787_s24   ;;  %s1333_s23 = sphi %s1402_s23, %s1786_s23   ;;  %s1329_s22 = sphi %s1400_s22, %s1785_s22   ;;  %s1325_s21 = sphi %s1398_s21, %s1784_s21  }
   0xc   : > { %s32_s7 = sadd.s32 1, %s1345_s26  ;;  %s35_s8 = sadd.s32 1, %s1349_s27 }
   0xd   : > { %p33_p0 = scmp.ge.s32.totalorder %s32_s7, 2  ;;  %p185_p1 = scmp.ne.s32.totalorder %s1333_s23, %s1329_s22 }
   0xe   : > { %p186_p2 = scmp.eq.s32.totalorder %s1012_s29, 3  ;;  %p191_p5 = scmp.ne.s32.totalorder %s1329_s22, %s1325_s21 }
   0xf   : > { %s1792_s7 = smov (%p33_p0, %s32_s7), 0  ;;  %s1794_s8 = smov (!%p33_p0, %s35_s8), %s1349_s27 }
  0x10   : > { %1773 = sst [smem:[#allocation8_spill]] %s1792_s7  ;;  %s171_s9 = ssub.s32 %s1345_s26, %s1792_s7 }
  0x11   : > { %p1449_p3 = por %p186_p2, %p185_p1  ;;  %p37_p4 = scmp.ge.s32.totalorder %s1794_s8, 2 }
  0x12   : > { %p192_p6 = scmp.eq.s32.totalorder %s1013_s30, 3  ;;  %p1016_p7 = scmp.ge.s32.totalorder %s1353_s28, 1 }
  0x13   : > { %s1796_s8 = smov (%p37_p4, %s1794_s8), 0  ;;  %p285_p9 = scmp.lt.s32.totalorder %s1353_s28, 5 }
  0x14   : > { %1775 = sst [smem:[#allocation9_spill]] %s1796_s8  ;;  %p1458_p8 = por %p192_p6, %p191_p5 }
  0x15   : > { %s170_s12 = ssub.s32 %s1349_s27, %s1796_s8  ;;  %s175_s13 = sadd.s32 1, %s1333_s23 }
  0x16   : > { %s172_s14 = sor.u32 %s171_s9, %s170_s12  ;;  %p286_p10 = pnand %p1016_p7, %p285_p9 }
  0x17   : > { %p173_p11 = scmp.eq.s32.totalorder %s172_s14, 0  ;;  %p346_p12 = scmp.lt.s32.totalorder (!%p286_p10), %s1341_s25, 1  ;;  %vm410_vm0 = vcmask (!%p286_p10), 1046528   ;;  %vm435_vm1 = vcmask (!%p286_p10), 1045504   ;;  %vm504_vm2 = vcmask (!%p286_p10), 64512   ;;  %vm509_vm3 = vcmask (!%p286_p10), 130048  }
  0x18   : > { %289 = sbr.rel (%p286_p10) target bundleno = 435 (0x1b3), region = 40  ;;  %s1062_s18 = sshll.u32 (!%p286_p10), %s1337_s24, 6  ;;  %vm514_vm4 = vcmask (!%p286_p10), 195584   ;;  %vm519_vm5 = vcmask (!%p286_p10), 261120   ;;  %vm524_vm6 = vcmask (!%p286_p10), 326656   ;;  %vm535_vm7 = vcmask (!%p286_p10), 392192  }
  0x19   : > { %s1467_s15 = scalar_select %p173_p11, %s1333_s23, %s175_s13  }
  0x1a   : > { %s1777_s0 = sld [smem:[#allocation10_spill]] (!%p286_p10)  ;;  %s1764_s9 = smov (!%p286_p10), 24   ;;  %vm385_vm9 = vcmask (!%p286_p10), 523264  }
  0x1b   : > { %s1766_s12 = smov (!%p286_p10), 8   ;;  %s1778_s1 = sld [smem:[#allocation11_spill]] (!%p286_p10) }
  0x1c   : > { %s1357_s13 = smov (!%p286_p10), 16   ;;  %s1779_s14 = smov (!%p286_p10), 8  }
  0x1d   : > { %s1358_s7 = smov (!%p286_p10), 32   ;;  %s1780_s8 = smov (!%p286_p10), 24  }
  0x1e   : > { %p353_p13 = scmp.lt.s32.totalorder (!%p286_p10), %s1337_s24, 1  ;;  %s1781_s2 = sld [smem:[#allocation12_spill]] (!%p286_p10) }
  0x1f   : > { %s1471_s16 = scalar_select %p346_p12, %s1341_s25, 1 }
  0x21   : > { %s1144_s17 = smul.u32 160, %s1471_s16  ;;  %v529_v22 = vld [vmem:[%s1778_s1] sm:$0xff]  ;;  %v530_v23 = vld [vmem:[%s1778_s1 + $0x8] sm:$0xff]  ;;  %v531_v24 = vld [vmem:[%s1778_s1 + $0x10] sm:$0xff] }
  0x22   : > { %v532_v25 = vld [vmem:[%s1778_s1 + $0x18] sm:$0xff]  ;;  %v1034_v26 = vld [vmem:[%s1778_s1 + $0x30] sm:$0xff]  ;;  %v1120_v28 = vpack.c.bf16 %v530_v23, %v529_v22  ;;  %v1036_v35 = vld [vmem:[%s1778_s1 + $0x40] sm:$0xff] }
  0x23   : > { %s350_s29 = scalar_lea.vmem %s1777_s0, %s1144_s17  ;;  %v1035_v27 = vld [vmem:[%s1778_s1 + $0x38] sm:$0xff]  ;;  %v1124_v33 = vpack.c.bf16 %v532_v25, %v531_v24  ;;  %v533_v36 = vld [vmem:[%s1778_s1 + $0x20] sm:$0xff]  ;;  %v534_v37 = vld [vmem:[%s1778_s1 + $0x28] sm:$0xff] }
  0x24   : > { %s1478_s30 = scalar_lea.vmem %s350_s29, %s1062_s18  ;;  %v1132_v34 = vpack.c.bf16 %v1035_v27, %v1034_v26  ;;  %1121 = vmatprep.subr.bf16.mxu0 %v1120_v28  ;;  %v1037_v38 = vld [vmem:[%s1778_s1 + $0x48] sm:$0xff]  ;;  %v1128_v42 = vpack.c.bf16 %v534_v37, %v533_v36  ;;  %v1038_v43 = vld [vmem:[%s1778_s1 + $0x50] sm:$0xff]  ;;  %v1039_v44 = vld [vmem:[%s1778_s1 + $0x58] sm:$0xff]  ;;  %s1360_s1 = smov [#allocation2]  }
  0x25   : > { %v1481_v0 = vld [vmem:[%s1478_s30 + $0x20] sm:$0xff]  ;;  %v1484_v1 = vld [vmem:[%s1478_s30 + $0x10] sm:$0xff]  ;;  %v395_v2 = vld [vmem:[%s1478_s30 + $0x28] sm:$0x3]  ;;  %1123 = vmatpush3.bf16.msra.mxu0 %v1120_v28  ;;  %v1136_v39 = vpack.c.bf16 %v1037_v38, %v1036_v35  ;;  %v1140_v45 = vpack.c.bf16 %v1039_v44, %v1038_v43 }
  0x26   : > { %463 = vrot.lane.b32.xlu1 %v1481_v0, %s1764_s9  ;;  %461 = vrot.lane.b32.xlu0 %v1484_v1, %s1764_s9  ;;  %v417_v3 = vrot.slane %v1481_v0, 1  ;;  %v418_v4 = vrot.slane %v395_v2, 1  ;;  %v1493_v5 = vld [vmem:[%s1478_s30] sm:$0xff]  ;;  %v391_v6 = vld [vmem:[%s1478_s30 + $0x8] sm:$0x3]  ;;  %v414_v7 = vrot.slane %v1484_v1, 1 }
  0x27   : > { %v411_v8 = vrot.slane %v1493_v5, 1  ;;  %v412_v9 = vrot.slane %v391_v6, 1  ;;  %v436_v10 = vrot.slane %v1493_v5, 2  ;;  %v437_v11 = vrot.slane %v391_v6, 2  ;;  %v393_v12 = vld [vmem:[%s1478_s30 + $0x18] sm:$0x3]  ;;  %1133 = vmatprep.subr.bf16.mxu1 %v1132_v34  ;;  %1125 = vmatprep.subr.bf16.mxu0 %v1124_v33 }
  0x28   : > { %v419_v13 = vsel %vm410_vm0, %v417_v3, %v418_v4  ;;  %v415_v14 = vrot.slane %v393_v12, 1  ;;  %v442_v16 = vrot.slane %v1481_v0, 2  ;;  %v443_v17 = vrot.slane %v395_v2, 2  ;;  %v1531_v31 = vld [vmem:[%s1478_s30 + $0x30] sm:$0xff]  ;;  %v397_v32 = vld [vmem:[%s1478_s30 + $0x38] sm:$0x3]  ;;  %1135 = vmatpush3.bf16.msra.mxu1 %v1132_v34 }
  0x29   : > { %v413_v15 = vsel %vm410_vm0, %v411_v8, %v412_v9  ;;  %v438_v18 = vsel %vm435_vm1, %v436_v10, %v437_v11  ;;  %v439_v20 = vrot.slane %v1484_v1, 2  ;;  %v440_v21 = vrot.slane %v393_v12, 2  ;;  %1137 = vmatprep.subr.bf16.mxu1 %v1136_v39  ;;  %1127 = vmatpush3.bf16.msra.mxu0 %v1124_v33  ;;  %v1563_v49 = vld [vmem:[%s1478_s30 + $0x40] sm:$0xff]  ;;  %v399_v50 = vld [vmem:[%s1478_s30 + $0x48] sm:$0x3]  ;;  %v400_v58 = vld [vmem:[%s1478_s30 + $0x50] sm:$0xff] }
  0x2a   : > { %427 = vrot.lane.b32.xlu1 %v419_v13, %s1766_s12  ;;  %423 = vrot.lane.b32.xlu0 %v413_v15, %s1766_s12  ;;  %v416_v19 = vsel %vm410_vm0, %v414_v7, %v415_v14  ;;  %v444_v29 = vsel %vm435_vm1, %v442_v16, %v443_v17  ;;  %v420_v40 = vrot.slane %v1531_v31, 1  ;;  %v421_v41 = vrot.slane %v397_v32, 1  ;;  %s1359_s12 = smov 40   ;;  %v401_v59 = vld [vmem:[%s1478_s30 + $0x58] sm:$0x3] }
  0x2b   : > { %v441_v30 = vsel %vm435_vm1, %v439_v20, %v440_v21  ;;  %1129 = vmatprep.subr.bf16.mxu0 %v1128_v42  ;;  %v445_v47 = vrot.slane %v1531_v31, 2  ;;  %v446_v48 = vrot.slane %v397_v32, 2  ;;  %v474_v52 = vrot.slane %v1563_v49, 1  ;;  %s354_s30 = scalar_select %p353_p13, %s1337_s24, 1 }
  0x2c   : > { %v422_v46 = vsel %vm410_vm0, %v420_v40, %v421_v41  ;;  %1139 = vmatpush3.bf16.msra.mxu1 %v1136_v39  ;;  %v475_v53 = vrot.slane %v399_v50, 1  ;;  %v489_v55 = vrot.slane %v1563_v49, 2  ;;  %v490_v56 = vrot.slane %v399_v50, 2 }
  0x2d   : > { %1141 = vmatprep.subr.bf16.mxu1 %v1140_v45  ;;  %1131 = vmatpush3.bf16.msra.mxu0 %v1128_v42  ;;  %v447_v51 = vsel %vm435_vm1, %v445_v47, %v446_v48  ;;  %v668_v60 = vrot.slane %v400_v58, 1  ;;  %v669_v61 = vrot.slane %v401_v59, 1  ;;  %v674_v62 = vrot.slane %v400_v58, 2 }
  0x2e   : > { %448 = vrot.lane.b32.xlu1 %v438_v18, %s1357_s13  ;;  %425 = vrot.lane.b32.xlu0 %v416_v19, %s1779_s14  ;;  %v476_v54 = vsel %vm410_vm0, %v474_v52, %v475_v53  ;;  %v491_v57 = vsel %vm435_vm1, %v489_v55, %v490_v56  ;;  %v675_v2 = vrot.slane %v401_v59, 2 }
  0x2f   : > { %v670_v63 = vsel %vm410_vm0, %v668_v60, %v669_v61 }
  0x30   : > { %1143 = vmatpush3.bf16.msra.mxu1 %v1140_v45  ;;  %v676_v3 = vsel %vm435_vm1, %v674_v62, %v675_v2 }
  0x32   : > { %452 = vrot.lane.b32.xlu1 %v444_v29, %s1357_s13  ;;  %450 = vrot.lane.b32.xlu0 %v441_v30, %s1357_s13 }
  0x36   : > { %477 = vrot.lane.b32.xlu1 %v416_v19, %s1358_s7  ;;  %465 = vrot.lane.b32.xlu0 %v1531_v31, %s1780_s8 }
  0x3a   : > { %429 = vrot.lane.b32.xlu1 %v422_v46, %s1779_s14  ;;  %479 = vrot.lane.b32.xlu0 %v419_v13, %s1358_s7 }
  0x3e   : > { %492 = vrot.lane.b32.xlu1 %v441_v30, %s1359_s12  ;;  %481 = vrot.lane.b32.xlu0 %v422_v46, %s1358_s7 }
  0x42   : > { %454 = vrot.lane.b32.xlu1 %v447_v51, %s1357_s13  ;;  %494 = vrot.lane.b32.xlu0 %v444_v29, %s1359_s12 }
  0x46   : > { %657 = vrot.lane.b32.xlu1 %v476_v54, %s1779_s14  ;;  %496 = vrot.lane.b32.xlu0 %v447_v51, %s1359_s12 }
  0x4a   : > { %660 = vrot.lane.b32.xlu1 %v491_v57, %s1357_s13  ;;  %467 = vrot.lane.b32.xlu0 %v1563_v49, %s1780_s8  ;;  %s1020_s13 = sshll.u32 %s1471_s16, 1 }
  0x4b   : > { %s356_s17 = sadd.s32 %s1020_s13, %s354_s30  ;;  %s1054_s30 = sshll.u32 %s1341_s25, 1 }
  0x4c   : > { %s1021_s18 = sshll.u32 %s356_s17, 3  ;;  %s823_s13 = sadd.s32 %s1337_s24, %s1054_s30 }
  0x4d   : > { %s358_s29 = scalar_lea.vmem %s1781_s2, %s1021_s18  ;;  %s1055_s17 = sshll.u32 %s823_s13, 7 }
  0x4e   : > { %664 = vrot.lane.b32.xlu1 %v400_v58, %s1780_s8  ;;  %483 = vrot.lane.b32.xlu0 %v476_v54, %s1358_s7  ;;  %v379_v52 = vld [vmem:[%s358_s29] sm:$0xff]  ;;  %s1632_s8 = sand.u32 1, %s1329_s22   ;;  %s1640_s0 = scalar_lea.hbm %s1762_s5, %s1055_s17 }
  0x4f   : > { %s807_s9 = scalar_lea.sflag [#allocation3], %s1632_s8  ;;  %s1231_s30 = sshll.u32 %s1360_s1, 4  ;;  %s1232_s30 = int_to_ptr.vmem [resolvable:$false] %s1231_s30 }
  0x50   : > { %s1233_s2 = scalar_lea.vmem %s1232_s30, 256 }
  0x52   : > { %671 = vrot.lane.b32.xlu1 %v670_v63, %s1358_s7  ;;  %498 = vrot.lane.b32.xlu0 %v491_v57, %s1359_s12  ;;  %s366_s7 = scalar_lea.vmem %s1760_s3, %s1021_s18 }
  0x53   : > { %v380_v53 = vld [vmem:[%s366_s7] sm:$0xff] }
  0x54   : > { %v381_v54 = vmul.f32 %v380_v53, %v379_v52 }
  0x56   : > { %677 = vrot.lane.b32.xlu0 %v676_v3, %s1359_s12  ;;  %s1017_s12 = sshll.u32 %s1632_s8, 3  ;;  %v383_v55 = vmul.f32 0.2, %v381_v54  ;;  %vm382_vm8 = vcmp.ge.f32.partialorder %v381_v54, 0.0 }
  0x57   : > { %s338_s19 = scalar_lea.vmem [#allocation2], %s1017_s12 }
  0x58   : > { %v384_v56 = vsel %vm382_vm8, %v381_v54, %v383_v55  ;;  %s827_s20 = sshll.u32 %s338_s19, 4  ;;  %s828_s20 = int_to_ptr.vmem [resolvable:$true] %s827_s20 }
  0x59   : > { %386 = vst.msk [vmem:[%s338_s19] sm:$0xff] %vm385_vm9, %v384_v56  ;;  %s1227_s7 = scalar_lea.vmem %s828_s20, 128  ;;  %p1234_p4 = scmp.lt.s32.totalorder %s828_s20, %s1232_s30 }
  0x5a   : > { %p1228_p0 = scmp.ne.s32.totalorder %s828_s20, %s1227_s7  ;;  %p1235_p5 = scmp.lt.s32.totalorder %s1233_s2, %s1227_s7 }
  0x5c   : > { %p1229_p1 = pnand %p1228_p0, %p1449_p3  ;;  %p1236_p6 = por %p1235_p5, %p1234_p4 }
  0x5e   : > { %p1230_p2 = pneg %p1229_p1 }
  0x60   : > { %p1237_p7 = pnand %p1236_p6, %p1230_p2 }
  0x98   : > { %v464_v4 = vpop.permute.xlu1 %463  ;;  %v462_v6 = vpop.permute.xlu0 %461 }
  0x9c   : > { %v428_v7 = vpop.permute.xlu1 %427  ;;  %v424_v8 = vpop.permute.xlu0 %423 }
  0x9d   : > { %v505_v15 = vsel %vm504_vm2, %v1493_v5, %v424_v8 }
  0xa0   : > { %v449_v9 = vpop.permute.xlu1 %448  ;;  %v426_v10 = vpop.permute.xlu0 %425 }
  0xa1   : > { %v510_v16 = vsel %vm509_vm3, %v505_v15, %v449_v9  ;;  %v506_v19 = vsel %vm504_vm2, %v1484_v1, %v426_v10  ;;  %v507_v1 = vsel %vm504_vm2, %v1481_v0, %v428_v7 }
  0xa2   : > { %v515_v20 = vsel %vm514_vm4, %v510_v16, %v462_v6 }
  0xa4   : > { %v453_v11 = vpop.permute.xlu1 %452  ;;  %v451_v12 = vpop.permute.xlu0 %450 }
  0xa5   : > { %v511_v21 = vsel %vm509_vm3, %v506_v19, %v451_v12  ;;  %v512_v30 = vsel %vm509_vm3, %v507_v1, %v453_v11 }
  0xa6   : > { %v516_v25 = vsel %vm514_vm4, %v511_v21, %v464_v4 }
  0xa8   : > { %v478_v13 = vpop.permute.xlu1 %477  ;;  %v466_v14 = vpop.permute.xlu0 %465 }
  0xa9   : > { %v520_v22 = vsel %vm519_vm5, %v515_v20, %v478_v13  ;;  %v517_v32 = vsel %vm514_vm4, %v512_v30, %v466_v14 }
  0xac   : > { %v430_v17 = vpop.permute.xlu1 %429  ;;  %v480_v18 = vpop.permute.xlu0 %479 }
  0xad   : > { %v521_v26 = vsel %vm519_vm5, %v516_v25, %v480_v18  ;;  %v508_v40 = vsel %vm504_vm2, %v1531_v31, %v430_v17 }
  0xb0   : > { %v493_v23 = vpop.permute.xlu1 %492  ;;  %v482_v24 = vpop.permute.xlu0 %481 }
  0xb1   : > { %v525_v5 = vsel %vm524_vm6, %v520_v22, %v493_v23  ;;  %v522_v33 = vsel %vm519_vm5, %v517_v32, %v482_v24 }
  0xb2   : > { %1096 = vmatprep.mubr.msk.f32.mxu0 %vm535_vm7, %v525_v5 }
  0xb4   : > { %v455_v27 = vpop.permute.xlu1 %454  ;;  %v495_v28 = vpop.permute.xlu0 %494 }
  0xb5   : > { %v526_v29 = vsel %vm524_vm6, %v521_v26, %v495_v28  ;;  %v513_v41 = vsel %vm509_vm3, %v508_v40, %v455_v27 }
  0xb6   : > { %1097 = vmatmul.mubr.msk.f32.vlgmr.msra.gmra.mrb[0].mxu0 %vm535_vm7, %v526_v29  ;;  %1114 = vmatprep.mubr.msk.f32.mxu1 %vm535_vm7, %v526_v29 }
  0xb8   : > { %v658_v34 = vpop.permute.xlu1 %657  ;;  %v497_v35 = vpop.permute.xlu0 %496 }
  0xb9   : > { %v527_v36 = vsel %vm524_vm6, %v522_v33, %v497_v35  ;;  %v680_v42 = vsel %vm504_vm2, %v1563_v49, %v658_v34 }
  0xba   : > { %1099 = vmatprep.mubr.msk.f32.mxu0 %vm535_vm7, %v527_v36  ;;  %1115 = vmatmul.mubr.msk.f32.vlgmr.msra.gmra.mrb[0].mxu1 %vm535_vm7, %v527_v36 }
  0xbc   : > { %v661_v0 = vpop.permute.xlu1 %660  ;;  %v468_v37 = vpop.permute.xlu0 %467 }
  0xbd   : > { %v518_v43 = vsel %vm514_vm4, %v513_v41, %v468_v37  ;;  %v681_v48 = vsel %vm509_vm3, %v680_v42, %v661_v0 }
  0xc0   : > { %v665_v38 = vpop.permute.xlu1 %664  ;;  %v484_v39 = vpop.permute.xlu0 %483 }
  0xc1   : > { %v523_v44 = vsel %vm519_vm5, %v518_v43, %v484_v39  ;;  %v682_v31 = vsel %vm514_vm4, %v681_v48, %v665_v38 }
  0xc4   : > { %v499_v45 = vpop.permute.xlu0 %498  ;;  %v672_v46 = vpop.permute.xlu1 %671 }
  0xc5   : > { %v528_v47 = vsel %vm524_vm6, %v523_v44, %v499_v45  ;;  %v683_v49 = vsel %vm519_vm5, %v682_v31, %v672_v46 }
  0xc6   : > { %1100 = vmatmul.mubr.msk.f32.gmra.mrb[2].mxu0 %vm535_vm7, %v528_v47  ;;  %1117 = vmatprep.mubr.msk.f32.mxu1 %vm535_vm7, %v528_v47 }
  0xc8   : > { %v678_v50 = vpop.permute.xlu0 %677 }
  0xc9   : > { %v684_v51 = vsel %vm524_vm6, %v683_v49, %v678_v50 }
  0xca   : > { %1118 = vmatmul.mubr.msk.f32.gmra.mrb[2].mxu1 %vm535_vm7, %v684_v51 }
  0xcb   : > { %1240 = shalt.err (!%p1237_p7)
}
  0xcc   : > { %s1241_s12 = scalar_lea.hbm %s1640_s0, 128  ;;  %s1245_s1 = scalar_lea.hbm %s1762_s5, 512 }
  0xcd   : > { %p1242_p9 = scmp.ne.s32.totalorder %s1640_s0, %s1241_s12  ;;  %p1246_p12 = scmp.lt.u32.totalorder %s1640_s0, %s1762_s5 }
  0xce   : > { %p1247_p13 = scmp.lt.u32.totalorder %s1245_s1, %s1241_s12  ;;  %p1249_p1 = scmp.lt.u32.totalorder %s1241_s12, %s1640_s0 }
  0xcf   : > { %p1243_p10 = pnand %p1242_p9, %p1449_p3 }
  0xd0   : > { %p1248_p0 = por %p1247_p13, %p1246_p12 }
  0xd1   : > { %p1244_p11 = pneg %p1243_p10 }
  0xd2   : > { %p1250_p2 = por %p1249_p1, %p1248_p0 }
  0xd4   : > { %p1251_p4 = pnand %p1250_p2, %p1244_p11 }
  0xd6   : > { %1254 = shalt.err (!%p1251_p4)
}
  0xd7   : > { %1145 = dma.vmem_to_hbm [thread:$0]  (%p1449_p3), %s828_s20, 128, %s1640_s0, %s807_s9  }
  0xd8   : > { %s1024_s2 = sshll.u32 %s1337_s24, 2  ;;  %s1026_s7 = sshll.u32 %s1471_s16, 4 }
  0xd9   : > { %p370_p5 = scmp.lt.s32.totalorder %s1024_s2, 7  ;;  %s1018_s19 = sshll.u32 %s1632_s8, 6 }
  0xda   : > { %s1672_s16 = scalar_lea.vmem [#allocation4], %s1018_s19  ;;  %s1063_s20 = sshll.u32 %s1337_s24, 3 }
  0xdb   : > { %s1798_s2 = smov (!%p370_p5, %s1024_s2), 7  ;;  %s1058_s0 = sshll.u32 %s1341_s25, 4 }
  0xdc   : > { %s1025_s29 = sshll.u32 %s1798_s2, 1  ;;  %s840_s9 = sadd.s32 %s1063_s20, %s1058_s0 }
  0xdd   : > { %s374_s30 = sadd.s32 %s1026_s7, %s1025_s29  ;;  %s843_s24 = sshll.u32 %s1672_s16, 4  ;;  %s1693_s24 = int_to_ptr.vmem [resolvable:$true] %s843_s24 }
  0xde   : > { %s1027_s13 = sshll.u32 %s374_s30, 3  ;;  %s1059_s25 = sshll.u32 %s840_s9, 7 }
  0xdf   : > { %s1665_s12 = scalar_lea.vmem %s1761_s4, %s1027_s13  ;;  %s1698_s29 = scalar_lea.hbm %s1763_s6, %s1059_s25 }
  0xe0   : > { %v634_v57 = vld [vmem:[%s1665_s12 + $0x10] sm:$0xff]  ;;  %v633_v58 = vld [vmem:[%s1665_s12] sm:$0xff]  ;;  %v1045_v63 = vld [vmem:[%s1665_s12 + $0x18] sm:$0xff]  ;;  %s812_s7 = scalar_lea.sflag [#allocation5], %s1632_s8  ;;  %s1255_s30 = scalar_lea.vmem %s1693_s24, 1024 }
  0xe1   : > { %v1044_v3 = vld [vmem:[%s1665_s12 + $0x8] sm:$0xff]  ;;  %v636_v16 = vld [vmem:[%s1665_s12 + $0x30] sm:$0xff]  ;;  %v635_v17 = vld [vmem:[%s1665_s12 + $0x20] sm:$0xff]  ;;  %p1256_p6 = scmp.ne.s32.totalorder %s1693_s24, %s1255_s30  ;;  %s1361_s13 = smov [#allocation4]  }
  0xe2   : > { %v1047_v22 = vld [vmem:[%s1665_s12 + $0x38] sm:$0xff]  ;;  %v1046_v24 = vld [vmem:[%s1665_s12 + $0x28] sm:$0xff]  ;;  %s1259_s17 = sshll.u32 %s1361_s13, 4  ;;  %s1260_s17 = int_to_ptr.vmem [resolvable:$false] %s1259_s17 }
  0xe3   : > { %p1257_p7 = pnand %p1256_p6, %p1449_p3  ;;  %s1261_s1 = scalar_lea.vmem %s1260_s17, 2048 }
  0xe4   : > { %p1262_p10 = scmp.lt.s32.totalorder %s1693_s24, %s1260_s17  ;;  %p1263_p11 = scmp.lt.s32.totalorder %s1261_s1, %s1255_s30 }
  0xe5   : > { %p1258_p9 = pneg %p1257_p7 }
  0xe6   : > { %p1264_p12 = por %p1263_p11, %p1262_p10 }
  0xe8   : > { %p1265_p13 = pnand %p1264_p12, %p1258_p9 }
 0x189   : > { %v1098_v59 = vpop.f32.mrb[0].mxu0 }
 0x18a   : > { %v638_v60 = vmul.f32 %v1098_v59, %v634_v57  ;;  %v614_v61 = vpop.f32.mrb[1].mxu0 }
 0x18b   : > { %v637_v62 = vmul.f32 %v633_v58, %v614_v61 }
 0x18c   : > { %vm642_vm10 = vcmp.ge.f32.partialorder %v638_v60, 0.0  ;;  %v646_v2 = vmul.f32 0.2, %v638_v60 }
 0x18d   : > { %vm641_vm11 = vcmp.ge.f32.partialorder %v637_v62, 0.0  ;;  %v645_v4 = vmul.f32 0.2, %v637_v62  ;;  %v1116_v6 = vpop.f32.mrb[0].mxu1 }
 0x18e   : > { %v650_v7 = vsel %vm642_vm10, %v638_v60, %v646_v2  ;;  %v786_v8 = vmul.f32 %v1116_v6, %v1045_v63  ;;  %v761_v9 = vpop.f32.mrb[1].mxu1 }
 0x18f   : > { %654 = vst.msk [vmem:[%s1672_s16 + $0x10] sm:$0xff] %vm504_vm2, %v650_v7  ;;  %v649_v10 = vsel %vm641_vm11, %v637_v62, %v645_v4  ;;  %v785_v11 = vmul.f32 %v1044_v3, %v761_v9 }
 0x190   : > { %653 = vst.msk [vmem:[%s1672_s16] sm:$0xff] %vm504_vm2, %v649_v10  ;;  %vm790_vm12 = vcmp.ge.f32.partialorder %v786_v8, 0.0  ;;  %v794_v12 = vmul.f32 0.2, %v786_v8 }
 0x191   : > { %vm789_vm13 = vcmp.ge.f32.partialorder %v785_v11, 0.0  ;;  %v793_v13 = vmul.f32 0.2, %v785_v11 }
 0x192   : > { %v798_v14 = vsel %vm790_vm12, %v786_v8, %v794_v12 }
 0x193   : > { %1049 = vst.msk [vmem:[%s1672_s16 + $0x18] sm:$0xff] %vm504_vm2, %v798_v14  ;;  %v797_v15 = vsel %vm789_vm13, %v785_v11, %v793_v13 }
 0x194   : > { %1048 = vst.msk [vmem:[%s1672_s16 + $0x8] sm:$0xff] %vm504_vm2, %v797_v15 }
 0x199   : > { %v1101_v18 = vpop.f32.mrb[2].mxu0 }
 0x19a   : > { %v640_v19 = vmul.f32 %v1101_v18, %v636_v16  ;;  %v624_v20 = vpop.f32.mrb[3].mxu0 }
 0x19b   : > { %v639_v21 = vmul.f32 %v635_v17, %v624_v20 }
 0x19c   : > { %vm644_vm14 = vcmp.ge.f32.partialorder %v640_v19, 0.0  ;;  %v648_v23 = vmul.f32 0.2, %v640_v19 }
 0x19d   : > { %vm643_vm15 = vcmp.ge.f32.partialorder %v639_v21, 0.0  ;;  %v647_v5 = vmul.f32 0.2, %v639_v21  ;;  %v1119_v25 = vpop.f32.mrb[2].mxu1 }
 0x19e   : > { %v652_v26 = vsel %vm644_vm14, %v640_v19, %v648_v23  ;;  %v788_v27 = vmul.f32 %v1119_v25, %v1047_v22  ;;  %v771_v28 = vpop.f32.mrb[3].mxu1 }
 0x19f   : > { %656 = vst.msk [vmem:[%s1672_s16 + $0x30] sm:$0xff] %vm504_vm2, %v652_v26  ;;  %v651_v1 = vsel %vm643_vm15, %v639_v21, %v647_v5  ;;  %v787_v29 = vmul.f32 %v1046_v24, %v771_v28 }
 0x1a0   : > { %655 = vst.msk [vmem:[%s1672_s16 + $0x20] sm:$0xff] %vm504_vm2, %v651_v1  ;;  %vm792_vm0 = vcmp.ge.f32.partialorder %v788_v27, 0.0  ;;  %v796_v30 = vmul.f32 0.2, %v788_v27 }
 0x1a1   : > { %vm791_vm1 = vcmp.ge.f32.partialorder %v787_v29, 0.0  ;;  %v795_v32 = vmul.f32 0.2, %v787_v29 }
 0x1a2   : > { %v800_v33 = vsel %vm792_vm0, %v788_v27, %v796_v30 }
 0x1a3   : > { %1051 = vst.msk [vmem:[%s1672_s16 + $0x38] sm:$0xff] %vm504_vm2, %v800_v33  ;;  %v799_v34 = vsel %vm791_vm1, %v787_v29, %v795_v32 }
 0x1a4   : > { %1050 = vst.msk [vmem:[%s1672_s16 + $0x28] sm:$0xff] %vm504_vm2, %v799_v34 }
 0x1a5   : > { %1268 = shalt.err (!%p1265_p13)
}
 0x1a6   : > { %s1269_s12 = scalar_lea.hbm %s1698_s29, 1024  ;;  %s1273_s20 = scalar_lea.hbm %s1763_s6, 4096 }
 0x1a7   : > { %p1270_p0 = scmp.ne.s32.totalorder %s1698_s29, %s1269_s12  ;;  %p1274_p4 = scmp.lt.u32.totalorder %s1698_s29, %s1763_s6 }
 0x1a8   : > { %p1275_p5 = scmp.lt.u32.totalorder %s1273_s20, %s1269_s12  ;;  %p1277_p7 = scmp.lt.u32.totalorder %s1269_s12, %s1698_s29 }
 0x1a9   : > { %p1271_p1 = pnand %p1270_p0, %p1449_p3 }
 0x1aa   : > { %p1276_p6 = por %p1275_p5, %p1274_p4 }
 0x1ab   : > { %p1272_p2 = pneg %p1271_p1 }
 0x1ac   : > { %p1278_p9 = por %p1277_p7, %p1276_p6 }
 0x1ae   : > { %p1279_p10 = pnand %p1278_p9, %p1272_p2 }
 0x1b0   : > { %1282 = shalt.err (!%p1279_p10)
}
 0x1b1   : > { %s1362_s25 = smov 128  }
 0x1b2   : > { %1146 = dma.vmem_to_hbm [thread:$0]  (%p1449_p3), %s1693_s24, 1024, %s1698_s29, %s812_s7, %s1362_s25, %s1362_s25, %s1779_s14  }
 0x1b3 PF: > { %p1156_p11 = scmp.ge.s32.totalorder %s1353_s28, 2  ;;  %s858_s18 = sand.u32 1, %s1325_s21  }
 0x1b4   : > { %s859_s2 = scalar_lea.sflag [#allocation3], %s858_s18 }
 0x1b5   : > { %p1150_p12 = pnand %p1156_p11, %p1458_p8 }
 0x1b7   : > { %1316 = dma.done.wait (!%p1150_p12), %s859_s2, 128  }
 0x1b8   : > { %1318 = vsyncadd (!%p1150_p12), %s859_s2, 4294967168  ;;  %s868_s30 = scalar_lea.sflag [#allocation5], %s858_s18 }
 0x1b9   : > { %1320 = dma.done.wait (!%p1150_p12), %s868_s30, 1024  }
 0x1ba   : > { %1322 = vsyncadd (!%p1150_p12), %s868_s30, 4294966272  ;;  %s23_s28 = sadd.s32 1, %s1353_s28   ;;  %s1782_s10 = sld [smem:[#allocation8_spill]] }
 0x1bb   : > { %p20_p13 = scmp.ge.s32.totalorder %s23_s28, 6   ;;  %s1783_s14 = sld [smem:[#allocation9_spill]] }
 0x1bc   : > { %s1784_s21 = smov %s1329_s22  ;;  %s1785_s22 = smov %s1333_s23 }
 0x1bd   : > { %s1786_s23 = smov %s1467_s15  ;;  %s1787_s24 = smov %s1345_s26 }
 0x1be   : > { %s1788_s25 = smov %s1349_s27  ;;  %22 = sbr.rel (!%p20_p13) target bundleno = 11 (0xb), region = 105 }
 0x1c0   : > { %s1789_s26 = smov %s1782_s10 }
 0x1c1   : > { %s1790_s27 = smov %s1783_s14 }
 0x1c5   :  { %873 = vsyncpa [#allocation3], 1 }
 0x1c6   :  { %875 = vsyncpa [#allocation3 + $0x1], 1 }
 0x1c7   :  { %876 = vsyncpa [#allocation5], 1 }
 0x1c8   :  { %878 = vsyncpa [#allocation5 + $0x1], 1 }

</bundles_post_ra>
